<compile_context>
chip_gen: v6e
topology: v6e:2x2x1
jax: 0.10.0
libtpu: 0.0.40
codegen_flags: <defaults>
</compile_context>

<pallas_src>
import jax
import jax.numpy as jnp
from jax import lax
from jax.experimental import pallas as pl
from jax.experimental.pallas import tpu as pltpu

STATE_SIZE = 24
ACTION_SIZE = 2
FC1 = 128
FC2 = 64


def actor_kernel(x_ref, w1_ref, b1_ref, w2_ref, b2_ref, w3_ref, b3_ref, o_ref):
    """Fused relu(W1 x)->relu(W2 .)->tanh(W3 .) with feature-major activations.

    x_ref : (bt, 24)        batch-major input tile
    w1    : (128, 24)       PyTorch orientation (out, in)
    w2    : (64, 128)
    w3    : (2, 64)
    b_l   : (out, 1)        column biases, broadcast over the batch/lane axis
    o_ref : (2, bt)         feature-major output tile -> lane-dense stores
    """
    x = x_ref[...]  # (bt, S)

    # Layer 1: contract the feature axes of (FC1, S) and (bt, S) -> (FC1, bt).
    h1 = lax.dot_general(
        w1_ref[...], x,
        dimension_numbers=(((1,), (1,)), ((), ())),
        preferred_element_type=jnp.float32,
    ) + b1_ref[...]
    h1 = jnp.maximum(h1, 0.0)  # (FC1, bt)

    # Layer 2: (FC2, FC1) @ (FC1, bt) -> (FC2, bt)
    h2 = jnp.dot(w2_ref[...], h1, preferred_element_type=jnp.float32) + b2_ref[...]
    h2 = jnp.maximum(h2, 0.0)  # (FC2, bt)

    # Layer 3: (2, FC2) @ (FC2, bt) -> (2, bt)
    h3 = jnp.dot(w3_ref[...], h2, preferred_element_type=jnp.float32) + b3_ref[...]
    o_ref[...] = jnp.tanh(h3).astype(o_ref.dtype)


def actor_forward(x, params, *, batch_tile=1024):
    """x: (B, STATE_SIZE) float32 -> (B, ACTION_SIZE) float32."""
    w1, b1, w2, b2, w3, b3 = params
    B = x.shape[0]

    if B <= batch_tile:
        # Single grid step; blocks equal the full array dims (always a legal tiling).
        bt = B
    else:
        # Output block's last (lane) dim must be a multiple of 128 when it is
        # not the full array extent.
        bt = max(128, (batch_tile // 128) * 128)

    grid = (pl.cdiv(B, bt),)

    # Parameters are tiny; each grid step gets the full tensors (constant index map).
    def full(arr):
        return pl.BlockSpec(arr.shape, lambda i: (0,) * arr.ndim)

    out_fm = pl.pallas_call(
        actor_kernel,
        out_shape=jax.ShapeDtypeStruct((ACTION_SIZE, B), jnp.float32),
        grid_spec=pltpu.PrefetchScalarGridSpec(
            num_scalar_prefetch=0,
            grid=grid,
            in_specs=[
                pl.BlockSpec((bt, STATE_SIZE), lambda i: (i, 0)),
                full(w1), full(b1),
                full(w2), full(b2),
                full(w3), full(b3),
            ],
            out_specs=pl.BlockSpec((ACTION_SIZE, bt), lambda i: (0, i)),
        ),
        compiler_params=pltpu.CompilerParams(
            dimension_semantics=("parallel",),
            vmem_limit_bytes=64 * 1024 * 1024,
        ),
    )(x, w1, b1, w2, b2, w3, b3)

    # Back to the PyTorch (batch, action) layout; transposing (2, B) is negligible.
    return out_fm.T


def init_params(key):
    """Shapes match the PyTorch module (weights in (out, in) orientation).

    reset_params() sets all weights to U(-0.003, 0.003); biases keep the
    nn.Linear default U(-1/sqrt(fan_in), 1/sqrt(fan_in)).
    """
    ks = jax.random.split(key, 6)

    def w(k, fan_in, fan_out):
        return jax.random.uniform(k, (fan_out, fan_in), jnp.float32, -0.003, 0.003)

    def b(k, fan_in, fan_out):
        bound = 1.0 / float(fan_in) ** 0.5
        return jax.random.uniform(k, (fan_out, 1), jnp.float32, -bound, bound)

    w1 = w(ks[0], STATE_SIZE, FC1)
    b1 = b(ks[1], STATE_SIZE, FC1)
    w2 = w(ks[2], FC1, FC2)
    b2 = b(ks[3], FC1, FC2)
    w3 = w(ks[4], FC2, ACTION_SIZE)
    b3 = b(ks[5], FC2, ACTION_SIZE)
    return (w1, b1, w2, b2, w3, b3)


def reference_forward(x, params):
    """Plain-JAX reference with identical math (PyTorch-layout weights)."""
    w1, b1, w2, b2, w3, b3 = params
    h1 = jnp.maximum(x @ w1.T + b1.T, 0.0)
    h2 = jnp.maximum(h1 @ w2.T + b2.T, 0.0)
    return jnp.tanh(h2 @ w3.T + b3.T)


if __name__ == "__main__":
    key = jax.random.PRNGKey(0)
    pkey, k1, k2 = jax.random.split(key, 3)
    params = init_params(pkey)

    # Case 1: small batch -> single grid step, block == full array.
    x_small = jax.random.normal(k1, (64, STATE_SIZE), jnp.float32)
    out_small = jax.block_until_ready(actor_forward(x_small, params))
    ref_small = reference_forward(x_small, params)
    assert out_small.shape == (64, ACTION_SIZE)
    assert jnp.allclose(out_small, ref_small, atol=1e-5), "mismatch (small batch)"

    # Case 2: multi-step grid with a partial tail tile (exercises masked
    # writeback and the megacore-parallel grid path).
    x_big = jax.random.normal(k2, (200, STATE_SIZE), jnp.float32)
    out_big = jax.block_until_ready(actor_forward(x_big, params, batch_tile=128))
    ref_big = reference_forward(x_big, params)
    assert out_big.shape == (200, ACTION_SIZE)
    assert jnp.allclose(out_big, ref_big, atol=1e-5), "mismatch (multi-tile batch)"

    print("KERNEL_OK")
</pallas_src>

<mosaic_0001>
module attributes {stable_mosaic.version = 11 : i64} {
  func.func @actor_kernel(%arg0: i32, %arg1: memref<64x24xf32, #tpu.memory_space<vmem>>, %arg2: memref<128x24xf32, #tpu.memory_space<vmem>>, %arg3: memref<128x1xf32, #tpu.memory_space<vmem>>, %arg4: memref<64x128xf32, #tpu.memory_space<vmem>>, %arg5: memref<64x1xf32, #tpu.memory_space<vmem>>, %arg6: memref<2x64xf32, #tpu.memory_space<vmem>>, %arg7: memref<2x1xf32, #tpu.memory_space<vmem>>, %arg8: memref<2x64xf32, #tpu.memory_space<vmem>>) attributes {dimension_semantics = [#tpu.dimension_semantics<parallel>], iteration_bounds = array<i64: 1>, scalar_prefetch = 0 : i64, scratch_operands = 0 : i64, tpu.core_type = #tpu.core_type<tc>, window_params = [{transform_indices = @transform_0, window_bounds = array<i64: 64, 24>}, {pipeline_mode = #tpu.pipeline_mode<synchronous>, transform_indices = @transform_1, window_bounds = array<i64: 128, 24>}, {pipeline_mode = #tpu.pipeline_mode<synchronous>, transform_indices = @transform_2, window_bounds = array<i64: 128, 1>}, {pipeline_mode = #tpu.pipeline_mode<synchronous>, transform_indices = @transform_3, window_bounds = array<i64: 64, 128>}, {pipeline_mode = #tpu.pipeline_mode<synchronous>, transform_indices = @transform_4, window_bounds = array<i64: 64, 1>}, {pipeline_mode = #tpu.pipeline_mode<synchronous>, transform_indices = @transform_5, window_bounds = array<i64: 2, 64>}, {pipeline_mode = #tpu.pipeline_mode<synchronous>, transform_indices = @transform_6, window_bounds = array<i64: 2, 1>}, {transform_indices = @transform_7, window_bounds = array<i64: 2, 64>}]} {
    %c0 = arith.constant 0 : index
    %c0_0 = arith.constant 0 : index
    %0 = vector.load %arg1[%c0, %c0_0] : memref<64x24xf32, #tpu.memory_space<vmem>>, vector<64x24xf32>
    %c0_1 = arith.constant 0 : index
    %c0_2 = arith.constant 0 : index
    %1 = vector.load %arg2[%c0_1, %c0_2] : memref<128x24xf32, #tpu.memory_space<vmem>>, vector<128x24xf32>
    %cst = arith.constant dense<0.000000e+00> : vector<128x64xf32>
    %2 = tpu.matmul %1, %0, %cst {dimension_numbers = #tpu.dot_dimension_numbers<[1], [1], [0], [0], [0, 0, 1, 0], [], []>} : vector<128x24xf32>, vector<64x24xf32>, vector<128x64xf32> -> vector<128x64xf32>
    %c0_3 = arith.constant 0 : index
    %c0_4 = arith.constant 0 : index
    %3 = vector.load %arg3[%c0_3, %c0_4] : memref<128x1xf32, #tpu.memory_space<vmem>>, vector<128x1xf32>
    %4 = vector.broadcast %3 : vector<128x1xf32> to vector<128x64xf32>
    %5 = arith.addf %2, %4 : vector<128x64xf32>
    %cst_5 = arith.constant 0.000000e+00 : f32
    %6 = vector.broadcast %cst_5 : f32 to vector<128x64xf32>
    %7 = arith.maximumf %5, %6 : vector<128x64xf32>
    %c0_6 = arith.constant 0 : index
    %c0_7 = arith.constant 0 : index
    %8 = vector.load %arg4[%c0_6, %c0_7] : memref<64x128xf32, #tpu.memory_space<vmem>>, vector<64x128xf32>
    %cst_8 = arith.constant dense<0.000000e+00> : vector<64x64xf32>
    %9 = tpu.matmul %8, %7, %cst_8 {dimension_numbers = #tpu.dot_dimension_numbers<[1], [0], [0], [1], [0, 0, 1, 1], [], []>} : vector<64x128xf32>, vector<128x64xf32>, vector<64x64xf32> -> vector<64x64xf32>
    %c0_9 = arith.constant 0 : index
    %c0_10 = arith.constant 0 : index
    %10 = vector.load %arg5[%c0_9, %c0_10] : memref<64x1xf32, #tpu.memory_space<vmem>>, vector<64x1xf32>
    %11 = vector.broadcast %10 : vector<64x1xf32> to vector<64x64xf32>
    %12 = arith.addf %9, %11 : vector<64x64xf32>
    %cst_11 = arith.constant 0.000000e+00 : f32
    %13 = vector.broadcast %cst_11 : f32 to vector<64x64xf32>
    %14 = arith.maximumf %12, %13 : vector<64x64xf32>
    %c0_12 = arith.constant 0 : index
    %c0_13 = arith.constant 0 : index
    %15 = vector.load %arg6[%c0_12, %c0_13] : memref<2x64xf32, #tpu.memory_space<vmem>>, vector<2x64xf32>
    %cst_14 = arith.constant dense<0.000000e+00> : vector<2x64xf32>
    %16 = tpu.matmul %15, %14, %cst_14 {dimension_numbers = #tpu.dot_dimension_numbers<[1], [0], [0], [1], [0, 0, 1, 1], [], []>} : vector<2x64xf32>, vector<64x64xf32>, vector<2x64xf32> -> vector<2x64xf32>
    %c0_15 = arith.constant 0 : index
    %c0_16 = arith.constant 0 : index
    %17 = vector.load %arg7[%c0_15, %c0_16] : memref<2x1xf32, #tpu.memory_space<vmem>>, vector<2x1xf32>
    %18 = vector.broadcast %17 : vector<2x1xf32> to vector<2x64xf32>
    %19 = arith.addf %16, %18 : vector<2x64xf32>
    %20 = math.tanh %19 : vector<2x64xf32>
    %c0_17 = arith.constant 0 : index
    %c0_18 = arith.constant 0 : index
    %21 = vector.load %arg8[%c0_17, %c0_18] : memref<2x64xf32, #tpu.memory_space<vmem>>, vector<2x64xf32>
    tpu.vector_store %arg8[%c0_17, %c0_18], %20 {strides = array<i32>} : memref<2x64xf32, #tpu.memory_space<vmem>>, vector<2x64xf32>,
    return
  }
  func.func @transform_0(%arg0: i32) -> (i32, i32) {
    %c0_i32 = arith.constant 0 : i32
    %c0_i32_0 = arith.constant 0 : i32
    return %arg0, %c0_i32 : i32, i32
  }
  func.func @transform_1(%arg0: i32) -> (i32, i32) {
    %c0_i32 = arith.constant 0 : i32
    %c0_i32_0 = arith.constant 0 : i32
    %c0_i32_1 = arith.constant 0 : i32
    return %c0_i32, %c0_i32_0 : i32, i32
  }
  func.func @transform_2(%arg0: i32) -> (i32, i32) {
    %c0_i32 = arith.constant 0 : i32
    %c0_i32_0 = arith.constant 0 : i32
    %c0_i32_1 = arith.constant 0 : i32
    return %c0_i32, %c0_i32_0 : i32, i32
  }
  func.func @transform_3(%arg0: i32) -> (i32, i32) {
    %c0_i32 = arith.constant 0 : i32
    %c0_i32_0 = arith.constant 0 : i32
    %c0_i32_1 = arith.constant 0 : i32
    return %c0_i32, %c0_i32_0 : i32, i32
  }
  func.func @transform_4(%arg0: i32) -> (i32, i32) {
    %c0_i32 = arith.constant 0 : i32
    %c0_i32_0 = arith.constant 0 : i32
    %c0_i32_1 = arith.constant 0 : i32
    return %c0_i32, %c0_i32_0 : i32, i32
  }
  func.func @transform_5(%arg0: i32) -> (i32, i32) {
    %c0_i32 = arith.constant 0 : i32
    %c0_i32_0 = arith.constant 0 : i32
    %c0_i32_1 = arith.constant 0 : i32
    return %c0_i32, %c0_i32_0 : i32, i32
  }
  func.func @transform_6(%arg0: i32) -> (i32, i32) {
    %c0_i32 = arith.constant 0 : i32
    %c0_i32_0 = arith.constant 0 : i32
    %c0_i32_1 = arith.constant 0 : i32
    return %c0_i32, %c0_i32_0 : i32, i32
  }
  func.func @transform_7(%arg0: i32) -> (i32, i32) {
    %c0_i32 = arith.constant 0 : i32
    %c0_i32_0 = arith.constant 0 : i32
    return %c0_i32, %arg0 : i32, i32
  }
}

</mosaic_0001>

<bundles_post_ra>
// kernel: tpu_custom_call.1
= control target key start
LH: loop header
LB: loop body
LE: loop exit
PB: predicated region body
PF: predicated region fallthrough
CT: control target
= control target key end

     0   :  { %vm147_vm0 = vcmask 195584   ;;  %v863_v2 = vmov 0   ;;  %s1128_s0 = inlined_call_operand.vmem [shape: f32[64,24], index: 0, kind: input, shape index: {}]   ;;  %s1129_s1 = inlined_call_operand.vmem [shape: f32[128,24], index: 1, kind: input, shape index: {}]   ;;  %s1130_s2 = inlined_call_operand.vmem [shape: f32[128,1], index: 2, kind: input, shape index: {}]   ;;  %s1131_s3 = inlined_call_operand.vmem [shape: f32[64,128], index: 3, kind: input, shape index: {}]   ;;  %s1132_s4 = inlined_call_operand.vmem [shape: f32[64,1], index: 4, kind: input, shape index: {}]   ;;  %s1133_s5 = inlined_call_operand.vmem [shape: f32[2,64], index: 5, kind: input, shape index: {}]   ;;  %s1134_s6 = inlined_call_operand.vmem [shape: f32[2,1], index: 6, kind: input, shape index: {}]   ;;  %s1135_s7 = inlined_call_operand.hbm [shape: f32[2,64], index: 7, kind: output, shape index: {}]  }
   0x1   :  { %v34_v0 = vld [vmem:[%s1128_s0 + $0x38] sm:$0xff]  ;;  %v33_v1 = vld [vmem:[%s1128_s0 + $0x30] sm:$0xff]  ;;  %837 = vset.pattern.permute.xlu0 %v863_v2  ;;  %v35_v3 = vld [vmem:[%s1129_s1] sm:$0xff]  ;;  %838 = vset.pattern.permute.xlu1 %v863_v2 }
   0x2   :  { %730 = vmatprep.subr.msk.mxu0 %vm147_vm0, %v34_v0  ;;  %746 = vmatprep.mubr.msk.f32.mxu0 %vm147_vm0, %v35_v3  ;;  %v32_v4 = vld [vmem:[%s1128_s0 + $0x28] sm:$0xff]  ;;  %v31_v5 = vld [vmem:[%s1128_s0 + $0x20] sm:$0xff]  ;;  %v66_v6 = vld [vmem:[%s1130_s2 + $0x78] sm:$0xff] }
   0x3   :  { %731 = vmatpush3.xpose.msk.msra.mxu0 %vm147_vm0, %v34_v0  ;;  %v64_v7 = vld [vmem:[%s1130_s2 + $0x68] sm:$0xff]  ;;  %144 = vperm.xlu0 %837, %v66_v6   ;;  %v65_v8 = vld [vmem:[%s1130_s2 + $0x70] sm:$0xff]  ;;  %v63_v9 = vld [vmem:[%s1130_s2 + $0x60] sm:$0xff] }
   0x4   :  { %732 = vmatprep.subr.msk.mxu0 %vm147_vm0, %v33_v1  ;;  %134 = vperm.xlu1 %838, %v64_v7   ;;  %v30_v10 = vld [vmem:[%s1128_s0 + $0x18] sm:$0xff]  ;;  %v61_v12 = vld [vmem:[%s1130_s2 + $0x50] sm:$0xff] }
   0x5   :  { %v62_v11 = vld [vmem:[%s1130_s2 + $0x58] sm:$0xff]  ;;  %v29_v13 = vld [vmem:[%s1128_s0 + $0x10] sm:$0xff] }
   0x7   :  { %733 = vmatpush3.xpose.msk.msra.mxu0 %vm147_vm0, %v33_v1  ;;  %139 = vperm.xlu0 %837, %v65_v8  }
   0x8   :  { %734 = vmatprep.subr.msk.mxu0 %vm147_vm0, %v32_v4  ;;  %129 = vperm.xlu1 %838, %v63_v9  }
   0xb   :  { %735 = vmatpush3.xpose.msk.msra.mxu0 %vm147_vm0, %v32_v4 }
   0xc   :  { %736 = vmatprep.subr.msk.mxu0 %vm147_vm0, %v31_v5 }
   0xf   :  { %737 = vmatpush3.xpose.msk.msra.mxu0 %vm147_vm0, %v31_v5 }
  0x10   :  { %738 = vmatprep.subr.msk.mxu0 %vm147_vm0, %v30_v10 }
  0x11   :  { %12 = vsyncpa [#allocation3], 0  ;;  %124 = vperm.xlu0 %837, %v62_v11   ;;  %119 = vperm.xlu1 %838, %v61_v12   ;;  %v60_v14 = vld [vmem:[%s1130_s2 + $0x48] sm:$0xff]  ;;  %v59_v15 = vld [vmem:[%s1130_s2 + $0x40] sm:$0xff]  ;;  %vm865_vm1 = vmmov 0   ;;  %vm557_vm2 = vcmask 523264  }
  0x12   :  { %v28_v16 = vld [vmem:[%s1128_s0 + $0x8] sm:$0xff]  ;;  %v58_v17 = vld [vmem:[%s1130_s2 + $0x38] sm:$0xff]  ;;  %v57_v18 = vld [vmem:[%s1130_s2 + $0x30] sm:$0xff]  ;;  %s866_s16 = smov [#allocation2]   ;;  %vm632_vm3 = vcmask 517120  }
  0x13   :  { %739 = vmatpush3.xpose.msk.msra.mxu0 %vm147_vm0, %v30_v10  ;;  %v27_v19 = vld [vmem:[%s1128_s0] sm:$0xff]  ;;  %v56_v20 = vld [vmem:[%s1130_s2 + $0x28] sm:$0xff]  ;;  %v54_v23 = vld [vmem:[%s1130_s2 + $0x18] sm:$0xff]  ;;  %s640_s17 = sshll.u32 %s866_s16, 4  ;;  %s641_s17 = int_to_ptr.vmem [resolvable:$true] %s640_s17 }
  0x14   :  { %740 = vmatprep.subr.msk.mxu0 %vm147_vm0, %v29_v13  ;;  %v55_v21 = vld [vmem:[%s1130_s2 + $0x20] sm:$0xff]  ;;  %v36_v22 = vld [vmem:[%s1129_s1 + $0x8] sm:$0xff]  ;;  %v37_v24 = vld [vmem:[%s1129_s1 + $0x10] sm:$0xff]  ;;  %s841_s18 = scalar_lea.vmem %s641_s17, 32  ;;  %p846_p1 = scmp.lt.s32.totalorder %s641_s17, %s641_s17 }
  0x15   :  { %114 = vperm.xlu0 %837, %v60_v14   ;;  %109 = vperm.xlu1 %838, %v59_v15   ;;  %v53_v25 = vld [vmem:[%s1130_s2 + $0x10] sm:$0xff]  ;;  %v38_v26 = vld [vmem:[%s1129_s1 + $0x18] sm:$0xff]  ;;  %v52_v27 = vld [vmem:[%s1130_s2 + $0x8] sm:$0xff]  ;;  %p842_p0 = scmp.ne.s32.totalorder %s641_s17, %s841_s18  ;;  %p847_p2 = scmp.lt.s32.totalorder %s841_s18, %s841_s18 }
  0x16   :  { %v39_v28 = vld [vmem:[%s1129_s1 + $0x20] sm:$0xff]  ;;  %v40_v30 = vld [vmem:[%s1129_s1 + $0x28] sm:$0xff]  ;;  %v396_v31 = vld [vmem:[%s1132_s4 + $0x38] sm:$0xff] }
  0x17   :  { %741 = vmatpush3.xpose.msk.msra.mxu0 %vm147_vm0, %v29_v13  ;;  %v51_v29 = vld [vmem:[%s1130_s2] sm:$0xff]  ;;  %v41_v32 = vld [vmem:[%s1129_s1 + $0x30] sm:$0xff]  ;;  %v42_v34 = vld [vmem:[%s1129_s1 + $0x38] sm:$0xff]  ;;  %p848_p3 = por %p847_p2, %p846_p1 }
  0x18   :  { %742 = vmatprep.subr.msk.mxu0 %vm147_vm0, %v28_v16  ;;  %v395_v33 = vld [vmem:[%s1132_s4 + $0x30] sm:$0xff]  ;;  %v394_v35 = vld [vmem:[%s1132_s4 + $0x28] sm:$0xff]  ;;  %v43_v36 = vld [vmem:[%s1129_s1 + $0x40] sm:$0xff] }
  0x19   :  { %104 = vperm.xlu0 %837, %v58_v17   ;;  %99 = vperm.xlu1 %838, %v57_v18   ;;  %v393_v37 = vld [vmem:[%s1132_s4 + $0x20] sm:$0xff]  ;;  %v44_v38 = vld [vmem:[%s1129_s1 + $0x48] sm:$0xff]  ;;  %v392_v39 = vld [vmem:[%s1132_s4 + $0x18] sm:$0xff]  ;;  %p849_p4 = pnand %p848_p3, %p842_p0 }
  0x1a   :  { %v45_v40 = vld [vmem:[%s1129_s1 + $0x50] sm:$0xff]  ;;  %v46_v42 = vld [vmem:[%s1129_s1 + $0x58] sm:$0xff]  ;;  %v390_v43 = vld [vmem:[%s1132_s4 + $0x8] sm:$0xff] }
  0x1b   :  { %743 = vmatpush3.xpose.msk.msra.mxu0 %vm147_vm0, %v28_v16  ;;  %v391_v41 = vld [vmem:[%s1132_s4 + $0x10] sm:$0xff]  ;;  %v47_v44 = vld [vmem:[%s1129_s1 + $0x60] sm:$0xff]  ;;  %v48_v46 = vld [vmem:[%s1129_s1 + $0x68] sm:$0xff] }
  0x1c   :  { %744 = vmatprep.subr.msk.mxu0 %vm147_vm0, %v27_v19  ;;  %v389_v45 = vld [vmem:[%s1132_s4] sm:$0xff]  ;;  %v49_v48 = vld [vmem:[%s1129_s1 + $0x70] sm:$0xff]  ;;  %v50_v49 = vld [vmem:[%s1129_s1 + $0x78] sm:$0xff] }
  0x1d   :  { %94 = vperm.xlu0 %837, %v56_v20   ;;  %89 = vperm.xlu1 %838, %v55_v21   ;;  %v551_v47 = vld [vmem:[%s1134_s6] sm:$0x3] }
  0x1e   :  { %v381_v50 = vld [vmem:[%s1131_s3] sm:$0xff] }
  0x1f   :  { %745 = vmatpush3.xpose.msk.msra.mxu0 %vm147_vm0, %v27_v19  ;;  %802 = vmatprep.mubr.f32.mxu1 %v381_v50 }
  0x21   :  { %84 = vperm.xlu0 %837, %v54_v23   ;;  %79 = vperm.xlu1 %838, %v53_v25  }
  0x22   :  { %747 = vmatmul.mubr.msk.f32.vlgmr.msra.gmra.mxu0 %vm147_vm0, %v36_v22 }
  0x23   :  { %749 = vmatprep.mubr.msk.f32.mxu0 %vm147_vm0, %v37_v24 }
  0x25   :  { %74 = vperm.xlu0 %837, %v52_v27   ;;  %69 = vperm.xlu1 %838, %v51_v29  }
  0x26   :  { %750 = vmatmul.mubr.msk.f32.gmra.mxu0 %vm147_vm0, %v38_v26 }
  0x27   :  { %752 = vmatprep.mubr.msk.f32.mxu0 %vm147_vm0, %v39_v28 }
  0x29   :  { %434 = vperm.xlu0 %837, %v396_v31   ;;  %429 = vperm.xlu1 %838, %v395_v33  }
  0x2a   :  { %753 = vmatmul.mubr.msk.f32.gmra.mxu0 %vm147_vm0, %v40_v30 }
  0x2b   :  { %755 = vmatprep.mubr.msk.f32.mxu0 %vm147_vm0, %v41_v32 }
  0x2d   :  { %424 = vperm.xlu0 %837, %v394_v35   ;;  %419 = vperm.xlu1 %838, %v393_v37  }
  0x2e   :  { %756 = vmatmul.mubr.msk.f32.gmra.mxu0 %vm147_vm0, %v42_v34 }
  0x2f   :  { %758 = vmatprep.mubr.msk.f32.mxu0 %vm147_vm0, %v43_v36 }
  0x31   :  { %414 = vperm.xlu0 %837, %v392_v39   ;;  %409 = vperm.xlu1 %838, %v391_v41  }
  0x32   :  { %759 = vmatmul.mubr.msk.f32.gmra.mxu0 %vm147_vm0, %v44_v38 }
  0x33   :  { %761 = vmatprep.mubr.msk.f32.mxu0 %vm147_vm0, %v45_v40 }
  0x35   :  { %404 = vperm.xlu0 %837, %v390_v43   ;;  %399 = vperm.xlu1 %838, %v389_v45  }
  0x36   :  { %762 = vmatmul.mubr.msk.f32.gmra.mxu0 %vm147_vm0, %v46_v42 }
  0x37   :  { %764 = vmatprep.mubr.msk.f32.mxu0 %vm147_vm0, %v47_v44 }
  0x39   :  { %554 = vperm.xlu0 %837, %v551_v47  }
  0x3a   :  { %765 = vmatmul.mubr.msk.f32.gmra.mxu0 %vm147_vm0, %v48_v46 }
  0x3b   :  { %767 = vmatprep.mubr.msk.f32.mxu0 %vm147_vm0, %v49_v48 }
  0x3e   :  { %768 = vmatmul.mubr.msk.f32.gmra.mxu0 %vm147_vm0, %v50_v49 }
  0x7e   :  { %v145_v56 = vpop.permute.xlu0 %144 }
  0x7f   :  { %v135_v58 = vpop.permute.xlu1 %134 }
  0x82   :  { %v140_v61 = vpop.permute.xlu0 %139 }
  0x83   :  { %v130_v63 = vpop.permute.xlu1 %129 }
  0x8c   :  { %v125_v2 = vpop.permute.xlu0 %124  ;;  %v120_v4 = vpop.permute.xlu1 %119 }
  0x90   :  { %v115_v7 = vpop.permute.xlu0 %114  ;;  %v110_v10 = vpop.permute.xlu1 %109 }
  0x94   :  { %v105_v17 = vpop.permute.xlu0 %104  ;;  %v100_v20 = vpop.permute.xlu1 %99 }
  0x98   :  { %v95_v25 = vpop.permute.xlu0 %94  ;;  %v90_v28 = vpop.permute.xlu1 %89 }
  0x9c   :  { %v85_v33 = vpop.permute.xlu0 %84  ;;  %v80_v36 = vpop.permute.xlu1 %79 }
  0xa0   :  { %v75_v41 = vpop.permute.xlu0 %74  ;;  %v70_v44 = vpop.permute.xlu1 %69 }
  0xe2   :  { %v1089_v51 = vpop.f32.mrf.mxu0 }
  0xe3   :  { %v292_v45 = vadd.f32 %v1089_v51, %v75_v41  ;;  %v383_v51 = vld [vmem:[%s1131_s3 + $0x10] sm:$0xff] }
  0xe4   :  { %v1091_v52 = vpop.f32.mrf.mxu0 }
  0xe5   :  { %v287_v47 = vadd.f32 %v1091_v52, %v70_v44  ;;  %v366_v49 = vmax.f32 %v292_v45, 0.0  ;;  %v384_v52 = vld [vmem:[%s1131_s3 + $0x18] sm:$0xff] }
  0xe6   :  { %v1093_v53 = vpop.f32.mrf.mxu0 }
  0xe7   :  { %v302_v39 = vadd.f32 %v1093_v53, %v85_v33  ;;  %v365_v50 = vmax.f32 %v287_v47, 0.0  ;;  %v382_v53 = vld [vmem:[%s1131_s3 + $0x8] sm:$0xff] }
  0xe8   :  { %v1095_v54 = vpop.f32.mrf.mxu0 }
  0xe9   :  { %v297_v42 = vadd.f32 %v1095_v54, %v80_v36  ;;  %v368_v46 = vmax.f32 %v302_v39, 0.0  ;;  %v385_v54 = vld [vmem:[%s1131_s3 + $0x20] sm:$0xff] }
  0xea   :  { %v754_v55 = vpop.f32.mrf.mxu0 }
  0xeb   :  { %v312_v34 = vadd.f32 %v754_v55, %v95_v25  ;;  %v367_v48 = vmax.f32 %v297_v42, 0.0  ;;  %v386_v55 = vld [vmem:[%s1131_s3 + $0x28] sm:$0xff] }
  0xec   :  { %v306_v57 = vpop.f32.mrf.mxu0 }
  0xed   :  { %v307_v37 = vadd.f32 %v306_v57, %v90_v28  ;;  %v370_v40 = vmax.f32 %v312_v34, 0.0  ;;  %v388_v57 = vld [vmem:[%s1131_s3 + $0x38] sm:$0xff] }
  0xee   :  { %v757_v59 = vpop.f32.mrf.mxu0 }
  0xef   :  { %v322_v29 = vadd.f32 %v757_v59, %v105_v17  ;;  %v369_v43 = vmax.f32 %v307_v37, 0.0 }
  0xf0   :  { %v316_v60 = vpop.f32.mrf.mxu0 }
  0xf1   :  { %v317_v31 = vadd.f32 %v316_v60, %v100_v20  ;;  %v372_v35 = vmax.f32 %v322_v29, 0.0 }
  0xf2   :  { %v760_v62 = vpop.f32.mrf.mxu0 }
  0xf3   :  { %v332_v23 = vadd.f32 %v760_v62, %v115_v7  ;;  %v371_v38 = vmax.f32 %v317_v31, 0.0 }
  0xf4   :  { %v326_v0 = vpop.f32.mrf.mxu0 }
  0xf5   :  { %v327_v26 = vadd.f32 %v326_v0, %v110_v10  ;;  %v374_v30 = vmax.f32 %v332_v23, 0.0 }
  0xf6   :  { %v763_v1 = vpop.f32.mrf.mxu0 }
  0xf7   :  { %v342_v18 = vadd.f32 %v763_v1, %v125_v2  ;;  %v373_v32 = vmax.f32 %v327_v26, 0.0 }
  0xf8   :  { %v336_v3 = vpop.f32.mrf.mxu0 }
  0xf9   :  { %v337_v21 = vadd.f32 %v336_v3, %v120_v4  ;;  %v376_v24 = vmax.f32 %v342_v18, 0.0 }
  0xfa   :  { %v766_v5 = vpop.f32.mrf.mxu0 }
  0xfb   :  { %v352_v12 = vadd.f32 %v766_v5, %v135_v58  ;;  %v375_v27 = vmax.f32 %v337_v21, 0.0  ;;  %v864_v58 = vmov 0.0  }
  0xfc   :  { %v346_v6 = vpop.f32.mrf.mxu0 }
  0xfd   :  { %v347_v15 = vadd.f32 %v346_v6, %v130_v63  ;;  %v378_v19 = vmax.f32 %v352_v12, 0.0  ;;  %v430_v63 = vpop.permute.xlu1 %429 }
  0xfe   :  { %v769_v8 = vpop.f32.mrf.mxu0 }
  0xff   :  { %v362_v9 = vadd.f32 %v769_v8, %v145_v56  ;;  %v377_v22 = vmax.f32 %v347_v15, 0.0  ;;  %v387_v56 = vld [vmem:[%s1131_s3 + $0x30] sm:$0xff] }
 0x100   :  { %v356_v11 = vpop.f32.mrf.mxu0 }
 0x101   :  { %v380_v13 = vmax.f32 %v362_v9, 0.0  ;;  %v357_v14 = vadd.f32 %v356_v11, %v140_v61  ;;  %v435_v61 = vpop.permute.xlu0 %434  ;;  %v420_v4 = vpop.permute.xlu1 %419 }
 0x103   :  { %v379_v16 = vmax.f32 %v357_v14, 0.0  ;;  %770 = vmatprep.subr.mxu1 %v380_v13 }
 0x104   :  { %771 = vmatpush3.msra.mxu1 %v380_v13 }
 0x105   :  { %772 = vmatprep.subr.mxu1 %v379_v16  ;;  %v425_v2 = vpop.permute.xlu0 %424  ;;  %v410_v14 = vpop.permute.xlu1 %409 }
 0x106   :  { %773 = vmatpush3.msra.mxu1 %v379_v16 }
 0x107   :  { %774 = vmatprep.subr.mxu1 %v378_v19 }
 0x108   :  { %775 = vmatpush3.msra.mxu1 %v378_v19 }
 0x109   :  { %776 = vmatprep.subr.mxu1 %v377_v22  ;;  %v415_v11 = vpop.permute.xlu0 %414 }
 0x10a   :  { %777 = vmatpush3.msra.mxu1 %v377_v22  ;;  %v400_v22 = vpop.permute.xlu1 %399 }
 0x10b   :  { %778 = vmatprep.subr.mxu1 %v376_v24 }
 0x10c   :  { %779 = vmatpush3.msra.mxu1 %v376_v24 }
 0x10d   :  { %780 = vmatprep.subr.mxu1 %v375_v27  ;;  %v405_v19 = vpop.permute.xlu0 %404 }
 0x10e   :  { %781 = vmatpush3.msra.mxu1 %v375_v27  ;;  %v550_v27 = vld [vmem:[%s1133_s5] sm:$0x3] }
 0x10f   :  { %782 = vmatprep.subr.mxu1 %v374_v30 }
 0x110   :  { %783 = vmatpush3.msra.mxu1 %v374_v30 }
 0x111   :  { %784 = vmatprep.subr.mxu1 %v373_v32  ;;  %v555_v28 = vpop.permute.xlu0 %554 }
 0x112   :  { %785 = vmatpush3.msra.mxu1 %v373_v32 }
 0x113   :  { %786 = vmatprep.subr.mxu1 %v372_v35 }
 0x114   :  { %787 = vmatpush3.msra.mxu1 %v372_v35 }
 0x115   :  { %788 = vmatprep.subr.mxu1 %v371_v38 }
 0x116   :  { %789 = vmatpush3.msra.mxu1 %v371_v38 }
 0x117   :  { %790 = vmatprep.subr.mxu1 %v370_v40 }
 0x118   :  { %791 = vmatpush3.msra.mxu1 %v370_v40 }
 0x119   :  { %792 = vmatprep.subr.mxu1 %v369_v43 }
 0x11a   :  { %793 = vmatpush3.msra.mxu1 %v369_v43 }
 0x11b   :  { %794 = vmatprep.subr.mxu1 %v368_v46 }
 0x11c   :  { %795 = vmatpush3.msra.mxu1 %v368_v46 }
 0x11d   :  { %796 = vmatprep.subr.mxu1 %v367_v48 }
 0x11e   :  { %797 = vmatpush3.msra.mxu1 %v367_v48 }
 0x11f   :  { %798 = vmatprep.subr.mxu1 %v366_v49 }
 0x120   :  { %799 = vmatpush3.msra.mxu1 %v366_v49 }
 0x121   :  { %800 = vmatprep.subr.mxu1 %v365_v50 }
 0x122   :  { %801 = vmatpush3.msra.mxu1 %v365_v50 }
 0x123   :  { %803 = vmatmul.mubr.f32.vlgmr.msra.gmra.mxu1 %v382_v53  ;;  %814 = vmatprep.subr.mxu1 %v864_v58 }
 0x124   :  { %805 = vmatprep.mubr.f32.mxu1 %v383_v51 }
 0x127   :  { %806 = vmatmul.mubr.f32.gmra.mxu1 %v384_v52 }
 0x128   :  { %808 = vmatprep.mubr.f32.mxu1 %v385_v54 }
 0x12b   :  { %809 = vmatmul.mubr.f32.gmra.mxu1 %v386_v55 }
 0x12c   :  { %811 = vmatprep.mubr.f32.mxu1 %v387_v56 }
 0x12f   :  { %812 = vmatmul.mubr.f32.gmra.mxu1 %v388_v57 }
 0x130   :  { %830 = vmatprep.mubr.msk.f32.mxu1 %vm865_vm1, %v864_v58 }
 0x1e3   :  { %v804_v59 = vpop.f32.mrf.mxu1 }
 0x1e4   :  { %v509_v20 = vadd.f32 %v804_v59, %v405_v19 }
 0x1e5   :  { %v503_v60 = vpop.f32.mrf.mxu1 }
 0x1e6   :  { %v504_v23 = vadd.f32 %v503_v60, %v400_v22  ;;  %v543_v25 = vmax.f32 %v509_v20, 0.0 }
 0x1e7   :  { %v807_v62 = vpop.f32.mrf.mxu1 }
 0x1e8   :  { %v519_v15 = vadd.f32 %v807_v62, %v415_v11  ;;  %v542_v26 = vmax.f32 %v504_v23, 0.0 }
 0x1e9   :  { %v513_v0 = vpop.f32.mrf.mxu1 }
 0x1ea   :  { %v514_v17 = vadd.f32 %v513_v0, %v410_v14  ;;  %v545_v21 = vmax.f32 %v519_v15, 0.0 }
 0x1eb   :  { %v810_v1 = vpop.f32.mrf.mxu1 }
 0x1ec   :  { %v529_v8 = vadd.f32 %v810_v1, %v425_v2  ;;  %v544_v24 = vmax.f32 %v514_v17, 0.0 }
 0x1ed   :  { %v523_v3 = vpop.f32.mrf.mxu1 }
 0x1ee   :  { %v524_v12 = vadd.f32 %v523_v3, %v420_v4  ;;  %v547_v16 = vmax.f32 %v529_v8, 0.0 }
 0x1ef   :  { %v813_v5 = vpop.f32.mrf.mxu1 }
 0x1f0   :  { %v539_v6 = vadd.f32 %v813_v5, %v435_v61  ;;  %v546_v18 = vmax.f32 %v524_v12, 0.0 }
 0x1f1   :  { %v533_v7 = vpop.f32.mrf.mxu1 }
 0x1f2   :  { %v549_v9 = vmax.f32 %v539_v6, 0.0  ;;  %v534_v10 = vadd.f32 %v533_v7, %v430_v63 }
 0x1f4   :  { %v548_v13 = vmax.f32 %v534_v10, 0.0  ;;  %815 = vmatpush3.msra.mxu1 %v549_v9 }
 0x1f5   :  { %816 = vmatprep.subr.mxu1 %v864_v58 }
 0x1f6   :  { %817 = vmatpush3.msra.mxu1 %v548_v13 }
 0x1f7   :  { %818 = vmatprep.subr.mxu1 %v864_v58 }
 0x1f8   :  { %819 = vmatpush3.msra.mxu1 %v547_v16 }
 0x1f9   :  { %820 = vmatprep.subr.mxu1 %v864_v58 }
 0x1fa   :  { %821 = vmatpush3.msra.mxu1 %v546_v18 }
 0x1fb   :  { %822 = vmatprep.subr.mxu1 %v864_v58 }
 0x1fc   :  { %823 = vmatpush3.msra.mxu1 %v545_v21 }
 0x1fd   :  { %824 = vmatprep.subr.mxu1 %v864_v58 }
 0x1fe   :  { %825 = vmatpush3.msra.mxu1 %v544_v24 }
 0x1ff   :  { %826 = vmatprep.subr.mxu1 %v864_v58 }
 0x200   :  { %827 = vmatpush3.msra.mxu1 %v543_v25 }
 0x201   :  { %828 = vmatprep.subr.mxu1 %v864_v58 }
 0x202   :  { %829 = vmatpush3.msra.mxu1 %v542_v26 }
 0x203   :  { %831 = vmatmul.mubr.msk.f32.vlgmr.msra.gmra.mxu1 %vm557_vm2, %v550_v27 }
 0x2c3   :  { %v627_v29 = vpop.f32.mrf.mxu1 }
 0x2c4   :  { %v628_v30 = vadd.f32 %v627_v29, %v555_v28 }
 0x2c5   :  { %v832_v31 = vpop.f32.mrf.mxu1 }
 0x2c6   :  { %839 = vtanh.f32 %v628_v30 }
 0x2d3   :  { %v840_v32 = vpop.eup %839 }
 0x2d4   :  { %633 = vst.msk [vmem:[#allocation2] sm:$0x3] %vm632_vm3, %v840_v32 }
 0x2d5   :  { %852 = shalt.err (!%p849_p4)
}
 0x2d6   :  { %643 = dma.vmem_to_hbm [thread:$0]  %s641_s17, 32, %s1135_s7, [#allocation3]  }
 0x2d7   :  { %861 = dma.done.wait [#allocation3], 32  }
 0x2d8   :  { %862 = vsyncadd [#allocation3], 4294967264 }
 0x2d9   :  { %647 = vsyncpa [#allocation3], 1 }

</bundles_post_ra>
